<compile_context>
chip_gen: v7x
topology: tpu7x:2x2x1
jax: 0.10.0
libtpu: 0.0.40
codegen_flags: <defaults>
</compile_context>

<pallas_src>
import jax
import jax.numpy as jnp
from jax.experimental import pallas as pl
from jax.experimental.pallas import tpu as pltpu

_LANE = 128


def _default_budgets():
    """(tile_budget_bytes, vmem_limit_bytes) chosen per TPU generation."""
    try:
        vmem_cap = pltpu.get_tpu_info().vmem_capacity_bytes
    except Exception:
        vmem_cap = 64 * 1024 * 1024  # be conservative (v7x-sized) if unknown
    if vmem_cap <= 64 * 1024 * 1024:
        # v7x: 64 MiB physical VMEM, 3.2 TB/s HBM -> ~16 MiB tiles amortize the
        # ~0.35 us per-step overhead while fitting double-buffering.
        return 16 * 1024 * 1024, 52 * 1024 * 1024
    # v5e / v6e: 128 MiB VMEM -> larger tiles are free headroom.
    return 28 * 1024 * 1024, 96 * 1024 * 1024


def _fold_slabs(x_ref, acc_ref, n_full, tail):
    """Fold `n_full` full 128-lane slabs (plus an optional masked `tail` slab)
    of x_ref (1, C, hw_tile) into acc_ref (1, C, 128) via elementwise max.
    `n_full` / `tail` are static Python ints."""
    if n_full > 0:
        if n_full > 16:
            # Many slabs: bounded code size, dynamic (aligned) lane slices.
            def body(j, carry):
                start = pl.multiple_of(j * _LANE, _LANE)
                acc_ref[...] = jnp.maximum(acc_ref[...],
                                           x_ref[:, :, pl.ds(start, _LANE)])
                return carry
            jax.lax.fori_loop(0, n_full, body, 0, unroll=8)
        else:
            for j in range(n_full):
                acc_ref[...] = jnp.maximum(
                    acc_ref[...], x_ref[:, :, j * _LANE:(j + 1) * _LANE])
    if tail:
        # Partial slab at the array boundary: mask out-of-range columns with
        # -inf so OOB garbage in the edge block can never win the max.
        slab = x_ref[:, :, n_full * _LANE:(n_full + 1) * _LANE]
        col = jax.lax.broadcasted_iota(jnp.int32, slab.shape, dimension=2)
        slab = jnp.where(col < tail, slab, jnp.asarray(-jnp.inf, slab.dtype))
        acc_ref[...] = jnp.maximum(acc_ref[...], slab)


def _make_kernel(hw_tile, last_valid, num_tiles):
    n_slabs = hw_tile // _LANE

    def kernel(x_ref, w1_ref, w2_ref, o_ref, acc_ref):
        # x_ref  : (1, C, hw_tile) spatial tile of one batch element
        # w1_ref : (C, C//16)      fc1 weight (matmul layout)
        # w2_ref : (C//16, C)      fc2 weight
        # o_ref  : (1, 1, C)       sigmoid attention for this batch element
        # acc_ref: (1, C, 128)     lane-shaped running-max accumulator
        k = pl.program_id(1)

        @pl.when(k == 0)
        def _init():
            acc_ref[...] = jnp.full(acc_ref.shape, -jnp.inf, dtype=acc_ref.dtype)

        if last_valid == hw_tile:
            # HW divides evenly: every tile is full, single fold path.
            _fold_slabs(x_ref, acc_ref, n_slabs, 0)
        else:
            @pl.when(k < num_tiles - 1)
            def _full_tile():
                _fold_slabs(x_ref, acc_ref, n_slabs, 0)

            @pl.when(k == num_tiles - 1)
            def _ragged_tile():
                _fold_slabs(x_ref, acc_ref,
                            last_valid // _LANE, last_valid % _LANE)

        @pl.when(k == num_tiles - 1)
        def _finalize():
            # AdaptiveMaxPool2d(1): single cross-lane reduce -> (1, C).
            pooled = jnp.max(acc_ref[...], axis=-1).astype(jnp.float32)
            # fc1 (1x1 conv, no bias) + ReLU
            h = jnp.dot(pooled, w1_ref[...].astype(jnp.float32),
                        preferred_element_type=jnp.float32,
                        precision=jax.lax.Precision.HIGHEST)
            h = jnp.maximum(h, 0.0)
            # fc2 (1x1 conv, no bias) + Sigmoid
            out = jnp.dot(h, w2_ref[...].astype(jnp.float32),
                          preferred_element_type=jnp.float32,
                          precision=jax.lax.Precision.HIGHEST)
            o_ref[...] = jax.nn.sigmoid(out).reshape(o_ref.shape).astype(o_ref.dtype)

    return kernel


def channel_attention(x, w1, w2, *, hw_tile=None,
                      tile_budget_bytes=None, vmem_limit_bytes=None):
    """x: (B, C, H, W) float.  w1: (C, C//16).  w2: (C//16, C).
    Returns sigmoid channel attention of shape (B, C, 1, 1)."""
    B, C, H, W = x.shape
    assert jnp.issubdtype(x.dtype, jnp.floating), \
        "running-max accumulator uses -inf; floating-point input required"
    HW = H * W
    x_flat = x.reshape(B, C, HW)

    if tile_budget_bytes is None or vmem_limit_bytes is None:
        tb, vl = _default_budgets()
        tile_budget_bytes = tile_budget_bytes or tb
        vmem_limit_bytes = vmem_limit_bytes or vl

    itemsize = jnp.dtype(x.dtype).itemsize
    bytes_per_col = C * itemsize
    if hw_tile is None:
        max_tile = max(_LANE,
                       (tile_budget_bytes // bytes_per_col) // _LANE * _LANE)
        hw_tile = min(max_tile, pl.cdiv(HW, _LANE) * _LANE)
    assert hw_tile % _LANE == 0, "hw_tile must be a multiple of 128"
    # TODO(synk): if C*128*itemsize alone exceeds the VMEM budget (extremely
    # wide C), add a second parallel grid axis tiling C as well.

    num_tiles = pl.cdiv(HW, hw_tile)
    last_valid = HW - (num_tiles - 1) * hw_tile  # valid columns in last tile

    kernel = _make_kernel(hw_tile, last_valid, num_tiles)

    out = pl.pallas_call(
        kernel,
        out_shape=jax.ShapeDtypeStruct((B, 1, C), x.dtype),
        grid_spec=pltpu.PrefetchScalarGridSpec(
            num_scalar_prefetch=0,
            grid=(B, num_tiles),
            in_specs=[
                # Per-batch spatial tiles stream through the pipeline.
                pl.BlockSpec((1, C, hw_tile), lambda b, k: (b, 0, k)),
                # Weights: full block, constant index map -> DMA'd once.
                pl.BlockSpec(w1.shape, lambda b, k: (0, 0)),
                pl.BlockSpec(w2.shape, lambda b, k: (0, 0)),
            ],
            out_specs=pl.BlockSpec((1, 1, C), lambda b, k: (b, 0, 0)),
            scratch_shapes=[pltpu.VMEM((1, C, _LANE), x.dtype)],
        ),
        compiler_params=pltpu.CompilerParams(
            # batch axis is independent (megacore-shardable on v7x);
            # spatial axis is the running-max reduction.
            dimension_semantics=("parallel", "arbitrary"),
            vmem_limit_bytes=vmem_limit_bytes,
        ),
    )(x_flat, w1, w2)

    return out.reshape(B, C, 1, 1)


if __name__ == "__main__":
    # in_planes must be >= 16 so hidden = in_planes // 16 is nonzero.
    # W=15 makes HW=240, so with hw_tile=128 the kernel exercises both the
    # multi-step running max and the in-kernel ragged-tail masking.
    B, C, H, W = 2, 64, 16, 15
    hidden = C // 16

    key = jax.random.PRNGKey(0)
    kx, k1, k2 = jax.random.split(key, 3)

    x = jax.random.normal(kx, (B, C, H, W), dtype=jnp.float32)
    # Weights stored as (in, out) matmul matrices (PyTorch Conv2d weight
    # (out, in, 1, 1) transposed, spatial dims squeezed).
    w1 = jax.random.normal(k1, (C, hidden), dtype=jnp.float32) * 0.1
    w2 = jax.random.normal(k2, (hidden, C), dtype=jnp.float32) * 0.1

    y = channel_attention(x, w1, w2, hw_tile=128)
    jax.block_until_ready(y)

    # Plain-JAX reference (same math as the PyTorch module's forward).
    pooled_ref = jnp.max(x.reshape(B, C, -1), axis=-1)
    h_ref = jnp.maximum(
        jnp.dot(pooled_ref, w1, precision=jax.lax.Precision.HIGHEST), 0.0)
    ref = jax.nn.sigmoid(
        jnp.dot(h_ref, w2, precision=jax.lax.Precision.HIGHEST)
    ).reshape(B, C, 1, 1)

    assert y.shape == (B, C, 1, 1)
    assert jnp.allclose(y, ref, atol=1e-5, rtol=1e-5), \
        float(jnp.max(jnp.abs(y - ref)))

    print("KERNEL_OK")
</pallas_src>

<mosaic_0001>
module attributes {stable_mosaic.version = 11 : i64} {
  func.func @kernel(%arg0: i32, %arg1: i32, %arg2: memref<1x64x128xf32, #tpu.memory_space<vmem>>, %arg3: memref<64x4xf32, #tpu.memory_space<vmem>>, %arg4: memref<4x64xf32, #tpu.memory_space<vmem>>, %arg5: memref<1x1x64xf32, #tpu.memory_space<vmem>>, %arg6: memref<1x64x128xf32, #tpu.memory_space<vmem>>) attributes {dimension_semantics = [#tpu.dimension_semantics<parallel>, #tpu.dimension_semantics<arbitrary>], iteration_bounds = array<i64: 2, 2>, scalar_prefetch = 0 : i64, scratch_operands = 1 : i64, tpu.core_type = #tpu.core_type<tc>, window_params = [{transform_indices = @transform_0, window_bounds = array<i64: 1, 64, 128>}, {pipeline_mode = #tpu.pipeline_mode<synchronous>, transform_indices = @transform_1, window_bounds = array<i64: 64, 4>}, {pipeline_mode = #tpu.pipeline_mode<synchronous>, transform_indices = @transform_2, window_bounds = array<i64: 4, 64>}, {transform_indices = @transform_3, window_bounds = array<i64: 1, 1, 64>}]} {
    %c0_i32 = arith.constant 0 : i32
    %0 = arith.cmpi eq, %arg1, %c0_i32 : i32
    %1 = arith.extui %0 : i1 to i32
    %c0_i32_0 = arith.constant 0 : i32
    %2 = arith.cmpi ne, %1, %c0_i32_0 : i32
    scf.if %2 {
      %cst = arith.constant 0xFF800000 : f32
      %12 = vector.broadcast %cst : f32 to vector<1x64x128xf32>
      %c0 = arith.constant 0 : index
      %c0_6 = arith.constant 0 : index
      %c0_7 = arith.constant 0 : index
      %13 = vector.load %arg6[%c0, %c0_6, %c0_7] : memref<1x64x128xf32, #tpu.memory_space<vmem>>, vector<1x64x128xf32>
      tpu.vector_store %arg6[%c0, %c0_6, %c0_7], %12 {strides = array<i32>} : memref<1x64x128xf32, #tpu.memory_space<vmem>>, vector<1x64x128xf32>,
    } else {
    }
    %c1_i32 = arith.constant 1 : i32
    %3 = arith.cmpi slt, %arg1, %c1_i32 : i32
    %4 = arith.extui %3 : i1 to i32
    %c0_i32_1 = arith.constant 0 : i32
    %5 = arith.cmpi ne, %4, %c0_i32_1 : i32
    scf.if %5 {
      %c0 = arith.constant 0 : index
      %c0_6 = arith.constant 0 : index
      %c0_7 = arith.constant 0 : index
      %12 = vector.load %arg6[%c0, %c0_6, %c0_7] : memref<1x64x128xf32, #tpu.memory_space<vmem>>, vector<1x64x128xf32>
      %c0_8 = arith.constant 0 : index
      %c0_9 = arith.constant 0 : index
      %c0_10 = arith.constant 0 : index
      %13 = vector.load %arg2[%c0_8, %c0_9, %c0_10] : memref<1x64x128xf32, #tpu.memory_space<vmem>>, vector<1x64x128xf32>
      %14 = arith.maximumf %12, %13 : vector<1x64x128xf32>
      %c0_11 = arith.constant 0 : index
      %c0_12 = arith.constant 0 : index
      %c0_13 = arith.constant 0 : index
      %15 = vector.load %arg6[%c0_11, %c0_12, %c0_13] : memref<1x64x128xf32, #tpu.memory_space<vmem>>, vector<1x64x128xf32>
      tpu.vector_store %arg6[%c0_11, %c0_12, %c0_13], %14 {strides = array<i32>} : memref<1x64x128xf32, #tpu.memory_space<vmem>>, vector<1x64x128xf32>,
    } else {
    }
    %c1_i32_2 = arith.constant 1 : i32
    %6 = arith.cmpi eq, %arg1, %c1_i32_2 : i32
    %7 = arith.extui %6 : i1 to i32
    %c0_i32_3 = arith.constant 0 : i32
    %8 = arith.cmpi ne, %7, %c0_i32_3 : i32
    scf.if %8 {
      %c0 = arith.constant 0 : index
      %c0_6 = arith.constant 0 : index
      %c0_7 = arith.constant 0 : index
      %12 = vector.load %arg2[%c0, %c0_6, %c0_7] : memref<1x64x128xf32, #tpu.memory_space<vmem>>, vector<1x64x128xf32>
      %13 = tpu.iota {dimensions = array<i32: 2>} : vector<1x64x128xi32>
      %c112_i32 = arith.constant 112 : i32
      %14 = vector.broadcast %c112_i32 : i32 to vector<1x64x128xi32>
      %15 = arith.cmpi slt, %13, %14 : vector<1x64x128xi32>
      %cst = arith.constant 0xFF800000 : f32
      %16 = vector.broadcast %cst : f32 to vector<1x64x128xf32>
      %17 = arith.select %15, %12, %16 : vector<1x64x128xi1>, vector<1x64x128xf32>
      %c0_8 = arith.constant 0 : index
      %c0_9 = arith.constant 0 : index
      %c0_10 = arith.constant 0 : index
      %18 = vector.load %arg6[%c0_8, %c0_9, %c0_10] : memref<1x64x128xf32, #tpu.memory_space<vmem>>, vector<1x64x128xf32>
      %19 = arith.maximumf %18, %17 : vector<1x64x128xf32>
      %c0_11 = arith.constant 0 : index
      %c0_12 = arith.constant 0 : index
      %c0_13 = arith.constant 0 : index
      %20 = vector.load %arg6[%c0_11, %c0_12, %c0_13] : memref<1x64x128xf32, #tpu.memory_space<vmem>>, vector<1x64x128xf32>
      tpu.vector_store %arg6[%c0_11, %c0_12, %c0_13], %19 {strides = array<i32>} : memref<1x64x128xf32, #tpu.memory_space<vmem>>, vector<1x64x128xf32>,
    } else {
    }
    %c1_i32_4 = arith.constant 1 : i32
    %9 = arith.cmpi eq, %arg1, %c1_i32_4 : i32
    %10 = arith.extui %9 : i1 to i32
    %c0_i32_5 = arith.constant 0 : i32
    %11 = arith.cmpi ne, %10, %c0_i32_5 : i32
    scf.if %11 {
      %c0 = arith.constant 0 : index
      %c0_6 = arith.constant 0 : index
      %c0_7 = arith.constant 0 : index
      %12 = vector.load %arg6[%c0, %c0_6, %c0_7] : memref<1x64x128xf32, #tpu.memory_space<vmem>>, vector<1x64x128xf32>
      %cst = arith.constant dense<0xFF800000> : vector<1x64xf32>
      %13 = vector.multi_reduction <maximumf>, %12, %cst [2] : vector<1x64x128xf32> to vector<1x64xf32>
      %c0_8 = arith.constant 0 : index
      %c0_9 = arith.constant 0 : index
      %14 = vector.load %arg3[%c0_8, %c0_9] : memref<64x4xf32, #tpu.memory_space<vmem>>, vector<64x4xf32>
      %cst_10 = arith.constant dense<0.000000e+00> : vector<1x4xf32>
      %15 = tpu.matmul %13, %14, %cst_10 {dimension_numbers = #tpu.dot_dimension_numbers<[1], [0], [0], [1], [0, 0, 1, 1], [], []>, precision = #tpu.contract_precision<fp32>} : vector<1x64xf32>, vector<64x4xf32>, vector<1x4xf32> -> vector<1x4xf32>
      %cst_11 = arith.constant 0.000000e+00 : f32
      %16 = vector.broadcast %cst_11 : f32 to vector<1x4xf32>
      %17 = arith.maximumf %15, %16 : vector<1x4xf32>
      %c0_12 = arith.constant 0 : index
      %c0_13 = arith.constant 0 : index
      %18 = vector.load %arg4[%c0_12, %c0_13] : memref<4x64xf32, #tpu.memory_space<vmem>>, vector<4x64xf32>
      %cst_14 = arith.constant dense<0.000000e+00> : vector<1x64xf32>
      %19 = tpu.matmul %17, %18, %cst_14 {dimension_numbers = #tpu.dot_dimension_numbers<[1], [0], [0], [1], [0, 0, 1, 1], [], []>, precision = #tpu.contract_precision<fp32>} : vector<1x4xf32>, vector<4x64xf32>, vector<1x64xf32> -> vector<1x64xf32>
      %20 = arith.negf %19 : vector<1x64xf32>
      %21 = math.exp %20 : vector<1x64xf32>
      %cst_15 = arith.constant 1.000000e+00 : f32
      %22 = vector.broadcast %cst_15 : f32 to vector<1x64xf32>
      %23 = arith.addf %22, %21 : vector<1x64xf32>
      %24 = arith.divf %22, %23 : vector<1x64xf32>
      %25 = vector.shape_cast %24 : vector<1x64xf32> to vector<1x1x64xf32>
      %c0_16 = arith.constant 0 : index
      %c0_17 = arith.constant 0 : index
      %c0_18 = arith.constant 0 : index
      %26 = vector.load %arg5[%c0_16, %c0_17, %c0_18] : memref<1x1x64xf32, #tpu.memory_space<vmem>>, vector<1x1x64xf32>
      tpu.vector_store %arg5[%c0_16, %c0_17, %c0_18], %25 {strides = array<i32>} : memref<1x1x64xf32, #tpu.memory_space<vmem>>, vector<1x1x64xf32>,
    } else {
    }
    return
  }
  func.func @transform_0(%arg0: i32, %arg1: i32) -> (i32, i32, i32) {
    %c0_i32 = arith.constant 0 : i32
    %c0_i32_0 = arith.constant 0 : i32
    return %arg0, %c0_i32, %arg1 : i32, i32, i32
  }
  func.func @transform_1(%arg0: i32, %arg1: i32) -> (i32, i32) {
    %c0_i32 = arith.constant 0 : i32
    %c0_i32_0 = arith.constant 0 : i32
    %c0_i32_1 = arith.constant 0 : i32
    return %c0_i32, %c0_i32_0 : i32, i32
  }
  func.func @transform_2(%arg0: i32, %arg1: i32) -> (i32, i32) {
    %c0_i32 = arith.constant 0 : i32
    %c0_i32_0 = arith.constant 0 : i32
    %c0_i32_1 = arith.constant 0 : i32
    return %c0_i32, %c0_i32_0 : i32, i32
  }
  func.func @transform_3(%arg0: i32, %arg1: i32) -> (i32, i32, i32) {
    %c0_i32 = arith.constant 0 : i32
    %c0_i32_0 = arith.constant 0 : i32
    %c0_i32_1 = arith.constant 0 : i32
    return %arg0, %c0_i32, %c0_i32_0 : i32, i32, i32
  }
}

</mosaic_0001>

<bundles_post_ra>
// kernel: tpu_custom_call.1
= control target key start
LH: loop header
LB: loop body
LE: loop exit
PB: predicated region body
PF: predicated region fallthrough
CT: control target
= control target key end

     0   :  { %8 = vsyncpa [#allocation4], 0  ;;  %s2563_s0 = inlined_call_operand.hbm [shape: f32[2,64,240], index: 0, kind: input, shape index: {}]   ;;  %s2564_s1 = inlined_call_operand.vmem [shape: f32[64,4], index: 1, kind: input, shape index: {}]   ;;  %s2565_s2 = inlined_call_operand.vmem [shape: f32[4,64], index: 2, kind: input, shape index: {}]   ;;  %s2566_s3 = inlined_call_operand.hbm [shape: f32[2,1,64], index: 3, kind: output, shape index: {}]  }
   0x1   :  { %10 = vsyncpa [#allocation4 + $0x1], 0 }
   0x2   :  { %11 = vsyncpa [#allocation5], 0 }
   0x3   :  { %13 = vsyncpa [#allocation5 + $0x1], 0  ;;  %s2100_s12 = smov 0   ;;  %s2102_s13 = smov 0  }
   0x4   :  { %s2104_s14 = smov 0   ;;  %s2106_s15 = smov 0  }
   0x5   :  { %s2108_s16 = smov 0   ;;  %s2110_s17 = smov 0  }
   0x6   :  { %s2112_s18 = smov 0   ;;  %s2114_s19 = smov 0  }
   0x7   :  { %s2116_s20 = smov 0   ;;  %s2118_s21 = smov 0  }
   0x8   :  { %s2120_s22 = smov 0  }
   0x9 LB: > { %s1487_s23 = sadd.s32 4294967295, %s2069_s22   ;;  %s1488_s24 = sadd.s32 4294967294, %s2069_s22   ;;  %s2069_s22 = sphi %s2120_s22, %s19_s22   ;;  %s2065_s21 = sphi %s2118_s21, %s2590_s21   ;;  %s2061_s20 = sphi %s2116_s20, %s2589_s20   ;;  %s2057_s19 = sphi %s2114_s19, %s2588_s19   ;;  %s2053_s18 = sphi %s2112_s18, %s2587_s18   ;;  %s2049_s17 = sphi %s2110_s17, %s2586_s17   ;;  %s2045_s16 = sphi %s2108_s16, %s2585_s16   ;;  %s2041_s15 = sphi %s2106_s15, %s2584_s15   ;;  %s2037_s14 = sphi %s2104_s14, %s2583_s14   ;;  %s2033_s13 = sphi %s2102_s13, %s2582_s13   ;;  %s2029_s12 = sphi %s2100_s12, %s2581_s12  }
   0xa   : > { %s28_s25 = sadd.s32 1, %s2061_s20  ;;  %s31_s26 = sadd.s32 1, %s2065_s21 }
   0xb   : > { %p29_p0 = scmp.ge.s32.totalorder %s28_s25, 2  ;;  %s40_s27 = sadd.s32 1, %s2049_s17 }
   0xc   : > { %p47_p1 = scmp.ne.s32.totalorder %s2049_s17, %s2045_s16  ;;  %p48_p2 = scmp.eq.s32.totalorder %s2069_s22, 0 }
   0xd   : > { %s2592_s25 = smov (%p29_p0, %s28_s25), 0  ;;  %s2594_s26 = smov (!%p29_p0, %s31_s26), %s2065_s21 }
   0xe   : > { %2570 = sst [smem:[#allocation9_spill]] %s2592_s25  ;;  %s36_s28 = ssub.s32 %s2061_s20, %s2592_s25 }
   0xf   : > { %p2166_p3 = por %p48_p2, %p47_p1  ;;  %p33_p4 = scmp.ge.s32.totalorder %s2594_s26, 2 }
  0x10   : > { %p53_p5 = scmp.ne.s32.totalorder %s2045_s16, %s2041_s15  ;;  %p54_p6 = scmp.eq.s32.totalorder %s1487_s23, 0 }
  0x11   : > { %s108_s30 = sadd.s32 1, %s2037_s14  ;;  %s2596_s26 = smov (%p33_p4, %s2594_s26), 0 }
  0x12   : > { %2572 = sst [smem:[#allocation10_spill]] %s2596_s26  ;;  %p2174_p7 = por %p54_p6, %p53_p5 }
  0x13   : > { %p118_p8 = scmp.ne.s32.totalorder %s2037_s14, %s2033_s13  ;;  %s35_s5 = ssub.s32 %s2065_s21, %s2596_s26 }
  0x14   : > { %p119_p9 = scmp.eq.s32.totalorder %s1487_s23, 3  ;;  %s37_s6 = sor.u32 %s36_s28, %s35_s5 }
  0x15   : > { %p106_p10 = scmp.eq.s32.totalorder %s35_s5, 0  ;;  %p38_p11 = scmp.eq.s32.totalorder %s37_s6, 0 }
  0x16   : > { %p2182_p12 = por %p119_p9, %p118_p8  ;;  %p124_p13 = scmp.ne.s32.totalorder %s2033_s13, %s2029_s12 }
  0x17   : > { %s2187_s8 = scalar_select %p106_p10, %s2037_s14, %s108_s30  }
  0x18   : > { %s2574_s7 = scalar_select %p2182_p12, 1, 0 }
  0x19   : > { %s2190_s9 = scalar_select %p38_p11, %s2049_s17, %s40_s27  }
  0x1a   : > { %p125_p0 = scmp.eq.s32.totalorder %s1488_s24, 3  ;;  %p1816_p1 = scmp.lt.s32.totalorder %s2069_s22, 4 }
  0x1b   : > { %s151_s11 = sand.u32 1, %s2049_s17   ;;  %s1492_s23 = sshll.u32 %s2065_s21, 4 }
  0x1c   : > { %p2195_p2 = por %p125_p0, %p124_p13  ;;  %s1491_s15 = sshll.u32 %s151_s11, 6 }
  0x1d   : > { %s160_s28 = sadd.s32 %s2061_s20, %s1492_s23  ;;  %s155_s5 = scalar_lea.vmem [#allocation3], %s1491_s15 }
  0x1e   : > { %s2575_s10 = scalar_select %p2195_p2, 1, 0 }
  0x1f   : > { %s163_s6 = sshll.u32 %s155_s5, 4  ;;  %s1493_s26 = sshll.u32 %s160_s28, 7  ;;  %s2202_s6 = int_to_ptr.vmem [resolvable:$true] %s163_s6 }
  0x20   : > { %s2207_s27 = scalar_lea.hbm %s2563_s0, %s1493_s26  ;;  %p2211_p4 = pnand %p1816_p1, %p2166_p3 }
  0x21   : > { %s2215_s15 = scalar_lea.sflag [#allocation4], %s151_s11  ;;  %s1917_s23 = scalar_lea.hbm %s2207_s27, 1024 }
  0x22   : > { %p1918_p5 = scmp.ne.s32.totalorder %s2207_s27, %s1917_s23  ;;  %p1919_p6 = pneg %p2211_p4 }
  0x23   : > { %s1922_s29 = scalar_lea.hbm %s2563_s0, 4096  ;;  %p1923_p3 = scmp.lt.u32.totalorder %s2207_s27, %s2563_s0 }
  0x24   : > { %p1920_p8 = pnand %p1919_p6, %p1918_p5  ;;  %p1924_p10 = scmp.lt.u32.totalorder %s1922_s29, %s1917_s23 }
  0x25   : > { %p1926_p13 = scmp.lt.u32.totalorder %s1917_s23, %s2207_s27 }
  0x26   : > { %p1921_p9 = pneg %p1920_p8  ;;  %p1925_p11 = por %p1924_p10, %p1923_p3 }
  0x28   : > { %p1927_p0 = por %p1926_p13, %p1925_p11 }
  0x2a   : > { %p1928_p1 = pnand %p1927_p0, %p1921_p9 }
  0x2c   : > { %1931 = shalt.err (!%p1928_p1)
}
  0x2d   : > { %s1932_s11 = scalar_lea.vmem %s2202_s6, 1024  ;;  %s2071_s30 = smov [#allocation3]  }
  0x2e   : > { %p1933_p5 = scmp.ne.s32.totalorder %s2202_s6, %s1932_s11  ;;  %s1937_s25 = sshll.u32 %s2071_s30, 4  ;;  %s1938_s25 = int_to_ptr.vmem [resolvable:$false] %s1937_s25 }
  0x2f   : > { %s1939_s26 = scalar_lea.vmem %s1938_s25, 2048  ;;  %p1940_p12 = scmp.lt.s32.totalorder %s2202_s6, %s1938_s25 }
  0x30   : > { %p1935_p8 = pnand %p1933_p5, %p1919_p6  ;;  %p1941_p3 = scmp.lt.s32.totalorder %s1939_s26, %s1932_s11 }
  0x32   : > { %p1936_p2 = pneg %p1935_p8  ;;  %p1942_p10 = por %p1941_p3, %p1940_p12 }
  0x34   : > { %p1943_p11 = pnand %p1942_p10, %p1936_p2 }
  0x36   : > { %1946 = shalt.err (!%p1943_p11)
}
  0x37   : > { %s2072_s23 = smov 256   ;;  %s2073_s29 = smov 128  }
  0x38   : > { %s2074_s28 = smov 8   ;;  %p1494_p6 = scmp.ge.s32.totalorder %s2069_s22, 1 }
  0x39   : > { %1811 = dma.hbm_to_vmem [thread:$0]  (!%p2211_p4), %s2207_s27, 1024, %s2202_s6, %s2215_s15, %s2072_s23, %s2073_s29, %s2074_s28  }
  0x3a   : > { %p171_p9 = scmp.lt.s32.totalorder %s2069_s22, 5 }
  0x3c   : > { %p172_p13 = pnand %p1494_p6, %p171_p9 }
  0x3d   : > { %s177_s5 = sand.u32 (!%p172_p13), 1, %s2045_s16  }
  0x3e   : > { %175 = sbr.rel (%p172_p13) target bundleno = 840 (0x348), region = 32  ;;  %s1495_s11 = sshll.u32 (!%p172_p13), %s177_s5, 6 }
  0x3f   : > { %s178_s30 = scalar_lea.sflag (!%p172_p13), [#allocation4], %s177_s5  ;;  %s2246_s25 = scalar_lea.vmem (!%p172_p13), [#allocation3], %s1495_s11 }
  0x45   : > { %2020 = dma.done.wait (%p2174_p7), %s178_s30, 1024  }
  0x46   : > { %2022 = vsyncadd (%p2174_p7), %s178_s30, 4294966272  ;;  %s201_s24 = sand.u32 1, %s2033_s13   ;;  %p1496_p12 = scmp.ne.s32.totalorder %s2053_s18, 0 }
  0x47   : > { %s2255_s6 = scalar_lea.vmem [#allocation6], %s201_s24  ;;  %v2075_v0 = vmov (!%p1496_p12), -inf  }
  0x48   : > { %206 = sbr.rel (%p1496_p12) target bundleno = 79 (0x4f), region = 40  ;;  %207 = vst [vmem:[#allocation2] sm:$0xff] (!%p1496_p12), %v2075_v0  ;;  %208 = vst [vmem:[#allocation2 + $0x8] sm:$0xff] (!%p1496_p12), %v2075_v0 }
  0x49   : > { %209 = vst [vmem:[#allocation2 + $0x10] sm:$0xff] (!%p1496_p12), %v2075_v0  ;;  %210 = vst [vmem:[#allocation2 + $0x18] sm:$0xff] (!%p1496_p12), %v2075_v0 }
  0x4a   : > { %211 = vst [vmem:[#allocation2 + $0x20] sm:$0xff] (!%p1496_p12), %v2075_v0  ;;  %212 = vst [vmem:[#allocation2 + $0x28] sm:$0xff] (!%p1496_p12), %v2075_v0 }
  0x4b   : > { %213 = vst [vmem:[#allocation2 + $0x30] sm:$0xff] (!%p1496_p12), %v2075_v0  ;;  %214 = vst [vmem:[#allocation2 + $0x38] sm:$0xff] (!%p1496_p12), %v2075_v0 }
  0x4f PF: > { %p1497_p7 = scmp.ge.s32.totalorder %s2053_s18, 1 }
  0x50   : > { %v219_v1 = vld [vmem:[#allocation2] sm:$0xff] (!%p1497_p7)  ;;  %v220_v3 = vld [vmem:[#allocation2 + $0x8] sm:$0xff] (!%p1497_p7)  ;;  %v221_v6 = vld [vmem:[#allocation2 + $0x10] sm:$0xff] (!%p1497_p7) }
  0x51   : > { %218 = sbr.rel (%p1497_p7) target bundleno = 89 (0x59), region = 44  ;;  %v227_v2 = vld [vmem:[%s2246_s25] sm:$0xff] (!%p1497_p7)  ;;  %v228_v5 = vld [vmem:[%s2246_s25 + $0x8] sm:$0xff] (!%p1497_p7)  ;;  %v229_v7 = vld [vmem:[%s2246_s25 + $0x10] sm:$0xff] (!%p1497_p7) }
  0x52   : > { %v235_v4 = vmax.f32 (!%p1497_p7), %v219_v1, %v227_v2  ;;  %v236_v8 = vmax.f32 (!%p1497_p7), %v220_v3, %v228_v5  ;;  %v237_v9 = vmax.f32 (!%p1497_p7), %v221_v6, %v229_v7  ;;  %v222_v10 = vld [vmem:[#allocation2 + $0x18] sm:$0xff] (!%p1497_p7)  ;;  %v223_v12 = vld [vmem:[#allocation2 + $0x20] sm:$0xff] (!%p1497_p7)  ;;  %v224_v15 = vld [vmem:[#allocation2 + $0x28] sm:$0xff] (!%p1497_p7) }
  0x53   : > { %v230_v11 = vld [vmem:[%s2246_s25 + $0x18] sm:$0xff] (!%p1497_p7)  ;;  %v231_v14 = vld [vmem:[%s2246_s25 + $0x20] sm:$0xff] (!%p1497_p7)  ;;  %v232_v16 = vld [vmem:[%s2246_s25 + $0x28] sm:$0xff] (!%p1497_p7) }
  0x54   : > { %243 = vst [vmem:[#allocation2] sm:$0xff] (!%p1497_p7), %v235_v4  ;;  %v238_v13 = vmax.f32 (!%p1497_p7), %v222_v10, %v230_v11  ;;  %244 = vst [vmem:[#allocation2 + $0x8] sm:$0xff] (!%p1497_p7), %v236_v8  ;;  %v239_v17 = vmax.f32 (!%p1497_p7), %v223_v12, %v231_v14  ;;  %v240_v18 = vmax.f32 (!%p1497_p7), %v224_v15, %v232_v16  ;;  %v225_v19 = vld [vmem:[#allocation2 + $0x30] sm:$0xff] (!%p1497_p7)  ;;  %v226_v21 = vld [vmem:[#allocation2 + $0x38] sm:$0xff] (!%p1497_p7) }
  0x55   : > { %245 = vst [vmem:[#allocation2 + $0x10] sm:$0xff] (!%p1497_p7), %v237_v9  ;;  %v233_v20 = vld [vmem:[%s2246_s25 + $0x30] sm:$0xff] (!%p1497_p7)  ;;  %v234_v23 = vld [vmem:[%s2246_s25 + $0x38] sm:$0xff] (!%p1497_p7) }
  0x56   : > { %246 = vst [vmem:[#allocation2 + $0x18] sm:$0xff] (!%p1497_p7), %v238_v13  ;;  %v241_v22 = vmax.f32 (!%p1497_p7), %v225_v19, %v233_v20  ;;  %247 = vst [vmem:[#allocation2 + $0x20] sm:$0xff] (!%p1497_p7), %v239_v17  ;;  %v242_v24 = vmax.f32 (!%p1497_p7), %v226_v21, %v234_v23 }
  0x57   : > { %248 = vst [vmem:[#allocation2 + $0x28] sm:$0xff] (!%p1497_p7), %v240_v18 }
  0x58   : > { %249 = vst [vmem:[#allocation2 + $0x30] sm:$0xff] %v241_v22  ;;  %250 = vst [vmem:[#allocation2 + $0x38] sm:$0xff] %v242_v24 }
  0x59 PF: > { %p1498_p2 = scmp.ne.s32.totalorder %s2053_s18, 1 }
  0x5a   : > { %v255_v25 = vld [vmem:[%s2246_s25] sm:$0xff] (!%p1498_p2)  ;;  %v263_v26 = vlaneseq (!%p1498_p2)  ;;  %v257_v28 = vld [vmem:[%s2246_s25 + $0x10] sm:$0xff] (!%p1498_p2)  ;;  %v256_v31 = vld [vmem:[%s2246_s25 + $0x8] sm:$0xff] (!%p1498_p2)  ;;  %v2076_v13 = vmov (!%p1498_p2), 0.0|0.0   ;;  %vm2077_vm1 = vmmov (!%p1498_p2), 0   ;;  %vm347_vm2 = vcmask (!%p1498_p2), 130112  }
  0x5b   : > { %254 = sbr.rel (%p1498_p2) target bundleno = 815 (0x32f), region = 48  ;;  %v258_v33 = vld [vmem:[%s2246_s25 + $0x18] sm:$0xff] (!%p1498_p2)  ;;  %v259_v36 = vld [vmem:[%s2246_s25 + $0x20] sm:$0xff] (!%p1498_p2)  ;;  %v260_v38 = vld [vmem:[%s2246_s25 + $0x28] sm:$0xff] (!%p1498_p2)  ;;  %1737 = vmatprep.subr.bf16.mxu0 (!%p1498_p2), %v2076_v13  ;;  %1713 = vmatprep.subr.bf16.mxu1 (!%p1498_p2), %v2076_v13  ;;  %vm354_vm3 = vcmask (!%p1498_p2), 195712   ;;  %vm361_vm4 = vcmask (!%p1498_p2), 261312  }
  0x5c   : > { %v274_v27 = vld [vmem:[#allocation2] sm:$0xff] (!%p1498_p2)  ;;  %v2270_v30 = vand.u32 (!%p1498_p2), 127, %v263_v26  ;;  %v275_v32 = vld [vmem:[#allocation2 + $0x8] sm:$0xff] (!%p1498_p2)  ;;  %v2274_v34 = vshrl.u32 (!%p1498_p2), %v263_v26, 7  ;;  %v261_v39 = vld [vmem:[%s2246_s25 + $0x30] sm:$0xff] (!%p1498_p2)  ;;  %vm368_vm5 = vcmask (!%p1498_p2), 326912  }
  0x5d   : > { %v276_v29 = vld [vmem:[#allocation2 + $0x10] sm:$0xff] (!%p1498_p2)  ;;  %v262_v40 = vld [vmem:[%s2246_s25 + $0x38] sm:$0xff] (!%p1498_p2)  ;;  %v322_v62 = vld [vmem:[%s2564_s1] sm:$0xff] (!%p1498_p2)  ;;  %vm375_vm6 = vcmask (!%p1498_p2), 392512   ;;  %vm382_vm7 = vcmask (!%p1498_p2), 458112   ;;  %vm389_vm8 = vcmask (!%p1498_p2), 523712  }
  0x5e   : > { %v277_v35 = vld [vmem:[#allocation2 + $0x18] sm:$0xff] (!%p1498_p2)  ;;  %v278_v37 = vld [vmem:[#allocation2 + $0x20] sm:$0xff] (!%p1498_p2)  ;;  %vm265_vm0 = vcmp.lt.s32.totalorder (!%p1498_p2), %v2270_v30, 112  ;;  %v340_v41 = vsub.s32 (!%p1498_p2), %v2270_v30, %v2274_v34  ;;  %v2300_v61 = vadd.s32 (!%p1498_p2), 4294967280, %v2270_v30  ;;  %v323_v63 = vld [vmem:[%s2564_s1 + $0x8] sm:$0xff] (!%p1498_p2)  ;;  %v395_v1 = vand.u32 (!%p1498_p2), 4294901760, %v322_v62 }
  0x5f   : > { %v266_v42 = vsel (!%p1498_p2), %vm265_vm0, %v255_v25, -inf  ;;  %v268_v43 = vsel (!%p1498_p2), %vm265_vm0, %v257_v28, -inf  ;;  %v267_v44 = vsel (!%p1498_p2), %vm265_vm0, %v256_v31, -inf  ;;  %v269_v45 = vsel (!%p1498_p2), %vm265_vm0, %v258_v33, -inf  ;;  %v279_v46 = vld [vmem:[#allocation2 + $0x28] sm:$0xff] (!%p1498_p2)  ;;  %v280_v47 = vld [vmem:[#allocation2 + $0x30] sm:$0xff] (!%p1498_p2) }
  0x60   : > { %v282_v48 = vmax.f32 (!%p1498_p2), %v274_v27, %v266_v42  ;;  %v284_v49 = vmax.f32 (!%p1498_p2), %v276_v29, %v268_v43  ;;  %v283_v50 = vmax.f32 (!%p1498_p2), %v275_v32, %v267_v44  ;;  %v285_v51 = vmax.f32 (!%p1498_p2), %v277_v35, %v269_v45  ;;  %v281_v52 = vld [vmem:[#allocation2 + $0x38] sm:$0xff] (!%p1498_p2)  ;;  %v324_v8 = vld [vmem:[%s2564_s1 + $0x10] sm:$0xff] (!%p1498_p2)  ;;  %v326_v20 = vld [vmem:[%s2564_s1 + $0x20] sm:$0xff] (!%p1498_p2) }
  0x61   : > { %v270_v53 = vsel (!%p1498_p2), %vm265_vm0, %v259_v36, -inf  ;;  %v271_v54 = vsel (!%p1498_p2), %vm265_vm0, %v260_v38, -inf  ;;  %v272_v55 = vsel (!%p1498_p2), %vm265_vm0, %v261_v39, -inf  ;;  %v273_v56 = vsel (!%p1498_p2), %vm265_vm0, %v262_v40, -inf  ;;  %v325_v9 = vld [vmem:[%s2564_s1 + $0x18] sm:$0xff] (!%p1498_p2)  ;;  %v327_v21 = vld [vmem:[%s2564_s1 + $0x28] sm:$0xff] (!%p1498_p2) }
  0x62   : > { %290 = vst [vmem:[#allocation2] sm:$0xff] %v282_v48  ;;  %306 = vmax.xlane.f32.xlu0 %v282_v48  ;;  %292 = vst [vmem:[#allocation2 + $0x10] sm:$0xff] %v284_v49  ;;  %310 = vmax.xlane.f32.xlu1 %v284_v49  ;;  %v286_v57 = vmax.f32 %v278_v37, %v270_v53  ;;  %v287_v58 = vmax.f32 %v279_v46, %v271_v54  ;;  %v398_v2 = vand.u32 4294901760, %v323_v63  ;;  %v328_v32 = vld [vmem:[%s2564_s1 + $0x30] sm:$0xff]  ;;  %v329_v33 = vld [vmem:[%s2564_s1 + $0x38] sm:$0xff]  ;;  %v2078_v46 = vmov 0.0  }
  0x63   : > { %291 = vst [vmem:[#allocation2 + $0x8] sm:$0xff] %v283_v50  ;;  %293 = vst [vmem:[#allocation2 + $0x18] sm:$0xff] %v285_v51  ;;  %v288_v59 = vmax.f32 %v280_v47, %v272_v55  ;;  %v289_v60 = vmax.f32 %v281_v52, %v273_v56  ;;  %v352_v0 = vsub.s32 %v2300_v61, %v2274_v34  ;;  %v2311_v3 = vadd.s32 4294967288, %v2270_v30 }
  0x64   : > { %294 = vst [vmem:[#allocation2 + $0x20] sm:$0xff] %v286_v57  ;;  %295 = vst [vmem:[#allocation2 + $0x28] sm:$0xff] %v287_v58  ;;  %v2314_v4 = vadd.s32 4294967272, %v2270_v30  ;;  %v2316_v5 = vsub.f32 %v322_v62, %v395_v1  ;;  %v2318_v6 = vsub.f32 %v323_v63, %v398_v2  ;;  %v401_v12 = vand.u32 4294901760, %v324_v8  ;;  %1623 = vmatprep.mubr.msk.f32.mxu0 %vm2077_vm1, %v2078_v46 }
  0x65   : > { %296 = vst [vmem:[#allocation2 + $0x30] sm:$0xff] %v288_v59  ;;  %297 = vst [vmem:[#allocation2 + $0x38] sm:$0xff] %v289_v60  ;;  %v345_v7 = vsub.s32 %v2311_v3, %v2274_v34  ;;  %v2334_v14 = vadd.s32 4294967264, %v2270_v30  ;;  %v404_v15 = vand.u32 4294901760, %v325_v9  ;;  %v2338_v16 = vadd.s32 4294967256, %v2270_v30  ;;  %1585 = vmatprep.mubr.msk.f32.mxu1 %vm2077_vm1, %v2078_v46 }
  0x66   : > { %308 = vmax.xlane.f32.xlu0 %v283_v50  ;;  %312 = vmax.xlane.f32.xlu1 %v285_v51  ;;  %v359_v10 = vsub.s32 %v2314_v4, %v2274_v34  ;;  %v1738_v11 = vpack.c.bf16 %v2318_v6, %v2316_v5  ;;  %v2340_v17 = vsub.f32 %v324_v8, %v401_v12  ;;  %v407_v23 = vand.u32 4294901760, %v326_v20 }
  0x67   : > { %v366_v18 = vsub.s32 %v2334_v14, %v2274_v34  ;;  %v2345_v19 = vsub.f32 %v325_v9, %v404_v15  ;;  %v373_v22 = vsub.s32 %v2338_v16, %v2274_v34  ;;  %v410_v24 = vand.u32 4294901760, %v327_v21 }
  0x68   : > { %1739 = vmatpush3.bf16.msra.mxu0 %v1738_v11  ;;  %v2357_v26 = vpack.c.bf16 %v398_v2, %v395_v1  ;;  %v2360_v27 = vadd.s32 4294967248, %v2270_v30  ;;  %v2363_v28 = vadd.s32 4294967240, %v2270_v30  ;;  %v2365_v29 = vsub.f32 %v326_v20, %v407_v23 }
  0x69   : > { %1740 = vmatprep.subr.bf16.mxu0 %v2076_v13  ;;  %v1741_v25 = vpack.c.bf16 %v2345_v19, %v2340_v17  ;;  %v514_v31 = vsub.f32 %v327_v21, %v410_v24  ;;  %v413_v37 = vand.u32 4294901760, %v328_v32  ;;  %v416_v39 = vand.u32 4294901760, %v329_v33 }
  0x6a   : > { %314 = vmax.xlane.f32.xlu0 %v286_v57  ;;  %316 = vmax.xlane.f32.xlu1 %v287_v58  ;;  %v380_v35 = vsub.s32 %v2360_v27, %v2274_v34  ;;  %v387_v36 = vsub.s32 %v2363_v28, %v2274_v34  ;;  %v2381_v40 = vpack.c.bf16 %v404_v15, %v401_v12  ;;  %v480_v47 = vand.u32 4294901760, %v2316_v5  ;;  %v932_v34 = vld [vmem:[%s2565_s2] sm:$0xf] }
  0x6b   : > { %1715 = vmatpush3.bf16.msra.mxu1 %v2357_v26  ;;  %v1744_v38 = vpack.c.bf16 %v514_v31, %v2365_v29  ;;  %v521_v42 = vsub.f32 %v328_v32, %v413_v37  ;;  %v528_v43 = vsub.f32 %v329_v33, %v416_v39  ;;  %v2385_v44 = vpack.c.bf16 %v410_v24, %v407_v23 }
  0x6c   : > { %1742 = vmatpush3.bf16.msra.mxu0 %v1741_v25  ;;  %1716 = vmatprep.subr.bf16.mxu1 %v2076_v13  ;;  %v487_v48 = vand.u32 4294901760, %v2318_v6  ;;  %v2397_v49 = vpack.c.bf16 %v416_v39, %v413_v37  ;;  %v481_v50 = vsub.f32 %v2316_v5, %v480_v47  ;;  %v494_v54 = vand.u32 4294901760, %v2340_v17 }
  0x6d   : > { %1743 = vmatprep.subr.bf16.mxu0 %v2076_v13  ;;  %v1747_v45 = vpack.c.bf16 %v528_v43, %v521_v42  ;;  %v501_v55 = vand.u32 4294901760, %v2345_v19  ;;  %v508_v62 = vand.u32 4294901760, %v2365_v29  ;;  %v515_v63 = vand.u32 4294901760, %v514_v31 }
  0x6e   : > { %318 = vmax.xlane.f32.xlu0 %v288_v59  ;;  %320 = vmax.xlane.f32.xlu1 %v289_v60  ;;  %v488_v51 = vsub.f32 %v2318_v6, %v487_v48  ;;  %v482_v52 = vand.u32 4294901760, %v481_v50  ;;  %v495_v57 = vsub.f32 %v2340_v17, %v494_v54  ;;  %v522_v9 = vand.u32 4294901760, %v521_v42 }
  0x6f   : > { %1718 = vmatpush3.bf16.msra.mxu1 %v2381_v40  ;;  %v502_v58 = vsub.f32 %v2345_v19, %v501_v55  ;;  %v509_v2 = vsub.f32 %v2365_v29, %v508_v62  ;;  %v516_v5 = vsub.f32 %v514_v31, %v515_v63  ;;  %v529_v11 = vand.u32 4294901760, %v528_v43 }
  0x70   : > { %1745 = vmatpush3.bf16.msra.mxu0 %v1744_v38  ;;  %1719 = vmatprep.subr.bf16.mxu1 %v2076_v13  ;;  %v489_v53 = vand.u32 4294901760, %v488_v51  ;;  %v496_v59 = vand.u32 4294901760, %v495_v57  ;;  %v523_v15 = vsub.f32 %v521_v42, %v522_v9  ;;  %v1762_v17 = vpack.c.bf16 %v487_v48, %v480_v47 }
  0x71   : > { %1746 = vmatprep.subr.bf16.mxu0 %v2076_v13  ;;  %v503_v60 = vand.u32 4294901760, %v502_v58  ;;  %v510_v6 = vand.u32 4294901760, %v509_v2  ;;  %v517_v8 = vand.u32 4294901760, %v516_v5  ;;  %v530_v20 = vsub.f32 %v528_v43, %v529_v11 }
  0x72   : > { %v2405_v56 = vpack.c.bf16 %v489_v53, %v482_v52  ;;  %v524_v21 = vand.u32 4294901760, %v523_v15  ;;  %v2413_v24 = vpack.c.bf16 %v501_v55, %v494_v54  ;;  %v2415_v25 = vpack.c.bf16 %v515_v63, %v508_v62 }
  0x73   : > { %1721 = vmatpush3.bf16.msra.mxu1 %v2385_v44  ;;  %v2410_v1 = vpack.c.bf16 %v503_v60, %v496_v59  ;;  %v1732_v12 = vpack.c.bf16 %v517_v8, %v510_v6  ;;  %v531_v19 = vand.u32 4294901760, %v530_v20  ;;  %v2417_v32 = vpack.c.bf16 %v529_v11, %v522_v9 }
  0x74   : > { %1748 = vmatpush3.bf16.msra.mxu0 %v1747_v45  ;;  %1722 = vmatprep.subr.bf16.mxu1 %v2076_v13  ;;  %vm391_vm9 = vcmask 523264   ;;  %vm937_vm10 = vcmask 1043456   ;;  %vm933_vm11 = vcmask 31744   ;;  %vm1393_vm12 = vcmask 516096  }
  0x75   : > { %1749 = vmatprep.subr.bf16.mxu0 %v2076_v13  ;;  %v1735_v23 = vpack.c.bf16 %v531_v19, %v524_v21 }
  0x77   : > { %1724 = vmatpush3.bf16.msra.mxu1 %v2397_v49 }
  0x78   : > { %1725 = vmatprep.subr.bf16.mxu1 %v2076_v13 }
  0xef   : > { %v307_v33 = vpop.xlane.xlu0 %306  ;;  %v311_v29 = vpop.xlane.xlu1 %310 }
  0xf0   : > { %v341_v38 = vrot.slane %v307_v33, %v340_v41  ;;  %v353_v43 = vrot.slane %v311_v29, %v352_v0 }
  0xf3   : > { %v309_v31 = vpop.xlane.xlu0 %308  ;;  %v313_v37 = vpop.xlane.xlu1 %312 }
  0xf4   : > { %v346_v39 = vrot.slane %v309_v31, %v345_v7  ;;  %v360_v42 = vrot.slane %v313_v37, %v359_v10 }
  0xf6   : > { %v348_v45 = vsel %vm347_vm2, %v346_v39, %v341_v38 }
  0xf7   : > { %v355_v47 = vsel %vm354_vm3, %v353_v43, %v348_v45  ;;  %v315_v48 = vpop.xlane.xlu0 %314  ;;  %v317_v30 = vpop.xlane.xlu1 %316 }
  0xf8   : > { %v362_v41 = vsel %vm361_vm4, %v360_v42, %v355_v47  ;;  %v367_v3 = vrot.slane %v315_v48, %v366_v18  ;;  %v374_v4 = vrot.slane %v317_v30, %v373_v22 }
  0xfa   : > { %v369_v7 = vsel %vm368_vm5, %v367_v3, %v362_v41 }
  0xfb   : > { %v376_v10 = vsel %vm375_vm6, %v374_v4, %v369_v7  ;;  %v319_v61 = vpop.xlane.xlu0 %318  ;;  %v321_v0 = vpop.xlane.xlu1 %320 }
  0xfc   : > { %v381_v50 = vrot.slane %v319_v61, %v380_v35  ;;  %v388_v14 = vrot.slane %v321_v0, %v387_v36 }
  0xfe   : > { %v383_v18 = vsel %vm382_vm7, %v381_v50, %v376_v10 }
  0xff   : > { %v390_v51 = vsel %vm389_vm8, %v388_v14, %v383_v18 }
 0x100   : > { %v392_v52 = vsel %vm391_vm9, %v390_v51, 0 }
 0x101   : > { %v467_v16 = vand.u32 4294901760, %v392_v52 }
 0x103   : > { %v468_v22 = vsub.f32 %v392_v52, %v467_v16 }
 0x105   : > { %1624 = vmatmul.mubr.f32.vlgmr.msra.gmra.mrb[0].mxu0 %v468_v22  ;;  %v469_v53 = vand.u32 4294901760, %v468_v22 }
 0x106   : > { %1751 = vmatpush3.bf16.msra.mxu0 %v2357_v26  ;;  %1642 = vmatprep.mubr.msk.f32.mxu0 %vm2077_vm1, %v2078_v46 }
 0x107   : > { %1752 = vmatprep.subr.bf16.mxu0 %v2076_v13  ;;  %v470_v27 = vsub.f32 %v468_v22, %v469_v53 }
 0x109   : > { %v471_v35 = vand.u32 4294901760, %v470_v27 }
 0x10a   : > { %1754 = vmatpush3.bf16.msra.mxu0 %v2381_v40 }
 0x10b   : > { %1586 = vmatmul.mubr.f32.vlgmr.msra.gmra.mrb[0].mxu1 %v471_v35  ;;  %1755 = vmatprep.subr.bf16.mxu0 %v2076_v13 }
 0x10c   : > { %1727 = vmatpush3.bf16.msra.mxu1 %v2405_v56  ;;  %1604 = vmatprep.mubr.msk.f32.mxu1 %vm2077_vm1, %v2078_v46 }
 0x10d   : > { %1728 = vmatprep.subr.bf16.mxu1 %v2076_v13 }
 0x10e   : > { %1757 = vmatpush3.bf16.msra.mxu0 %v2385_v44 }
 0x10f   : > { %1758 = vmatprep.subr.bf16.mxu0 %v2076_v13 }
 0x110   : > { %1730 = vmatpush3.bf16.msra.mxu1 %v2410_v1 }
 0x111   : > { %1731 = vmatprep.subr.bf16.mxu1 %v2076_v13 }
 0x112   : > { %1760 = vmatpush3.bf16.msra.mxu0 %v2397_v49 }
 0x113   : > { %1761 = vmatprep.subr.bf16.mxu0 %v2076_v13 }
 0x114   : > { %1733 = vmatpush3.bf16.msra.mxu1 %v1732_v12 }
 0x115   : > { %1643 = vmatmul.mubr.f32.vlgmr.msra.gmra.mrb[0].mxu0 %v469_v53  ;;  %1734 = vmatprep.subr.bf16.mxu1 %v2076_v13 }
 0x116   : > { %1763 = vmatpush3.bf16.msra.mxu0 %v1762_v17  ;;  %1661 = vmatprep.mubr.msk.f32.mxu0 %vm2077_vm1, %v2078_v46 }
 0x117   : > { %1764 = vmatprep.subr.bf16.mxu0 %v2076_v13 }
 0x118   : > { %1736 = vmatpush3.bf16.msra.mxu1 %v1735_v23 }
 0x119   : > { %1683 = vmatprep.subr.mxu1 %v2078_v46 }
 0x11a   : > { %1766 = vmatpush3.bf16.msra.mxu0 %v2413_v24 }
 0x11b   : > { %1605 = vmatmul.mubr.f32.vlgmr.msra.gmra.mrb[0].mxu1 %v467_v16  ;;  %1767 = vmatprep.subr.bf16.mxu0 %v2076_v13 }
 0x11c   : > { %1685 = vmatprep.mubr.msk.f32.mxu1 %vm2077_vm1, %v2078_v46 }
 0x11e   : > { %1769 = vmatpush3.bf16.msra.mxu0 %v2415_v25 }
 0x11f   : > { %1770 = vmatprep.subr.bf16.mxu0 %v2076_v13 }
 0x122   : > { %1772 = vmatpush3.bf16.msra.mxu0 %v2417_v32 }
 0x123   : > { %1773 = vmatprep.subr.bf16.mxu0 %v2076_v13 }
 0x125   : > { %1662 = vmatmul.mubr.f32.vlgmr.msra.gmra.mrb[0].mxu0 %v467_v16 }
 0x126   : > { %1775 = vmatpush3.bf16.msra.mxu0 %v2357_v26  ;;  %1680 = vmatprep.mubr.msk.f32.mxu0 %vm2077_vm1, %v2078_v46  ;;  %v939_v26 = vsel %vm937_vm10, %v932_v34, 0 }
 0x127   : > { %1776 = vmatprep.subr.bf16.mxu0 %v2076_v13  ;;  %v942_v28 = vand.u32 4294901760, %v939_v26 }
 0x129   : > { %1684 = vmatpush3.msra.mxu1 %v942_v28  ;;  %v1019_v56 = vsub.f32 %v939_v26, %v942_v28 }
 0x12a   : > { %1778 = vmatpush3.bf16.msra.mxu0 %v2381_v40  ;;  %1688 = vmatprep.subr.mxu1 %v2078_v46 }
 0x12b   : > { %1779 = vmatprep.subr.bf16.mxu0 %v2076_v13  ;;  %v1020_v57 = vand.u32 4294901760, %v1019_v56 }
 0x12d   : > { %v1021_v60 = vsub.f32 %v1019_v56, %v1020_v57 }
 0x12e   : > { %1781 = vmatpush3.bf16.msra.mxu0 %v2385_v44 }
 0x12f   : > { %1782 = vmatprep.subr.bf16.mxu0 %v2076_v13  ;;  %v1022_v1 = vand.u32 4294901760, %v1021_v60 }
 0x132   : > { %1784 = vmatpush3.bf16.msra.mxu0 %v2397_v49 }
 0x135   : > { %1681 = vmatmul.mubr.f32.vlgmr.msra.gmra.mrb[0].mxu0 %v467_v16 }
 0x1ee   : > { %v584_v36 = vpop.f32.mrb[0].mxu1 }
 0x1ef   : > { %v1606_v40 = vpop.f32.mrb[1].mxu1 }
 0x208   : > { %v927_v54 = vpop.f32.mrb[0].mxu0 }
 0x209   : > { %v1785_v55 = vadd.f32 %v927_v54, %v584_v36  ;;  %v1682_v44 = vpop.f32.mrb[1].mxu0 }
 0x20b   : > { %v931_v13 = vmax.f32 %v1785_v55, 0.0 }
 0x20d   : > { %v935_v49 = vsel %vm933_vm11, %v931_v13, 0 }
 0x20e   : > { %v1007_v58 = vand.u32 4294901760, %v935_v49 }
 0x210   : > { %v1008_v59 = vsub.f32 %v935_v49, %v1007_v58 }
 0x212   : > { %v1009_v62 = vand.u32 4294901760, %v1008_v59 }
 0x214   : > { %v1010_v63 = vsub.f32 %v1008_v59, %v1009_v62 }
 0x216   : > { %v1011_v2 = vand.u32 4294901760, %v1010_v63 }
 0x218   : > { %1686 = vmatmul.mubr.f32.vlgmr.msra.gmra.mrb[2].mxu1 %v1011_v2 }
 0x219   : > { %1689 = vmatpush3.msra.mxu1 %v1022_v1  ;;  %1690 = vmatprep.mubr.msk.f32.mxu1 %vm2077_vm1, %v2078_v46 }
 0x21a   : > { %1693 = vmatprep.subr.mxu1 %v2078_v46 }
 0x220   : > { %1691 = vmatmul.mubr.f32.vlgmr.msra.gmra.mrb[2].mxu1 %v1007_v58 }
 0x221   : > { %1694 = vmatpush3.msra.mxu1 %v1019_v56  ;;  %1695 = vmatprep.mubr.msk.f32.mxu1 %vm2077_vm1, %v2078_v46 }
 0x222   : > { %1698 = vmatprep.subr.mxu1 %v2078_v46 }
 0x228   : > { %1696 = vmatmul.mubr.f32.vlgmr.msra.gmra.mrb[2].mxu1 %v1008_v59 }
 0x229   : > { %1699 = vmatpush3.msra.mxu1 %v942_v28  ;;  %1700 = vmatprep.mubr.msk.f32.mxu1 %vm2077_vm1, %v2078_v46 }
 0x22a   : > { %1703 = vmatprep.subr.mxu1 %v2078_v46 }
 0x230   : > { %1701 = vmatmul.mubr.f32.vlgmr.msra.gmra.mrb[2].mxu1 %v1009_v62 }
 0x231   : > { %1704 = vmatpush3.msra.mxu1 %v1020_v57  ;;  %1705 = vmatprep.mubr.msk.f32.mxu1 %vm2077_vm1, %v2078_v46 }
 0x232   : > { %1708 = vmatprep.subr.mxu1 %v2078_v46 }
 0x238   : > { %1706 = vmatmul.mubr.f32.vlgmr.msra.gmra.mrb[2].mxu1 %v1007_v58 }
 0x239   : > { %1709 = vmatpush3.msra.mxu1 %v942_v28  ;;  %1710 = vmatprep.mubr.msk.f32.mxu1 %vm2077_vm1, %v2078_v46 }
 0x240   : > { %1711 = vmatmul.mubr.f32.vlgmr.msra.gmra.mrb[2].mxu1 %v1007_v58 }
 0x313   : > { %v1383_v5 = vpop.f32.mrb[2].mxu1 }
 0x314   : > { %v1499_v6 = vmul.f32 -1.442695, %v1383_v5  ;;  %v1712_v8 = vpop.f32.mrb[3].mxu1 }
 0x316   : > { %1913 = vpow2.f32 %v1499_v6 }
 0x320   : > { %v1914_v9 = vpop.eup %1913 }
 0x321   : > { %v1390_v11 = vadd.f32 1.0, %v1914_v9 }
 0x323   : > { %1915 = vrcp.f32 %v1390_v11 }
 0x32d   : > { %v1916_v12 = vpop.eup %1915 }
 0x32e   : > { %1394 = vst.msk [vmem:[%s2255_s6] sm:$0x1] %vm1393_vm12, %v1916_v12 }
 0x32f PF: > { %s1500_s29 = sshll.u32 %s2057_s19, 4  ;;  %s1408_s30 = sshll.u32 %s2255_s6, 4  ;;  %s1409_s30 = int_to_ptr.vmem [resolvable:$true] %s1408_s30 }
 0x330   : > { %s2504_s11 = scalar_lea.hbm %s2566_s3, %s1500_s29  ;;  %s1396_s25 = scalar_lea.sflag [#allocation5], %s201_s24 }
 0x331   : > { %s1947_s18 = scalar_lea.vmem %s1409_s30, 16  ;;  %p2577_p0 = scmp.ne.s32.totalorder %s2574_s7, 0 }
 0x332   : > { %p1948_p4 = scmp.ne.s32.totalorder %s1409_s30, %s1947_s18  ;;  %s2079_s4 = smov [#allocation6]  }
 0x333   : > { %s1951_s27 = sshll.u32 %s2079_s4, 4  ;;  %s1952_s27 = int_to_ptr.vmem [resolvable:$false] %s1951_s27 }
 0x334   : > { %p1949_p1 = pnand %p1948_p4, %p2577_p0  ;;  %s1953_s15 = scalar_lea.vmem %s1952_s27, 32 }
 0x335   : > { %p1954_p8 = scmp.lt.s32.totalorder %s1409_s30, %s1952_s27  ;;  %p1955_p3 = scmp.lt.s32.totalorder %s1953_s15, %s1947_s18 }
 0x336   : > { %p1950_p5 = pneg %p1949_p1 }
 0x337   : > { %p1956_p10 = por %p1955_p3, %p1954_p8 }
 0x339   : > { %p1957_p11 = pnand %p1956_p10, %p1950_p5 }
 0x33b   : > { %1960 = shalt.err (!%p1957_p11)
}
 0x33c   : > { %s1961_s19 = scalar_lea.hbm %s2504_s11, 16  ;;  %s1965_s26 = scalar_lea.hbm %s2566_s3, 32 }
 0x33d   : > { %p1962_p6 = scmp.ne.s32.totalorder %s2504_s11, %s1961_s19  ;;  %p1966_p12 = scmp.lt.u32.totalorder %s2504_s11, %s2566_s3 }
 0x33e   : > { %p1967_p7 = scmp.lt.u32.totalorder %s1965_s26, %s1961_s19  ;;  %p1969_p4 = scmp.lt.u32.totalorder %s1961_s19, %s2504_s11 }
 0x33f   : > { %p1963_p9 = pnand %p1962_p6, %p2577_p0 }
 0x340   : > { %p1968_p2 = por %p1967_p7, %p1966_p12 }
 0x341   : > { %p1964_p13 = pneg %p1963_p9 }
 0x342   : > { %p1970_p1 = por %p1969_p4, %p1968_p2 }
 0x344   : > { %p1971_p5 = pnand %p1970_p1, %p1964_p13 }
 0x346   : > { %1974 = shalt.err (!%p1971_p5)
}
 0x347   : > { %1806 = dma.vmem_to_hbm [thread:$0]  (%p2577_p0), %s1409_s30, 16, %s2504_s11, %s1396_s25  }
 0x348 PF: > { %p1817_p8 = scmp.ge.s32.totalorder %s2069_s22, 2  ;;  %s1420_s28 = sand.u32 1, %s2029_s12  }
 0x349   : > { %p2578_p3 = scmp.ne.s32.totalorder %s2575_s10, 0  ;;  %s1421_s5 = scalar_lea.sflag [#allocation5], %s1420_s28 }
 0x34b   : > { %p1813_p10 = pnand %p1817_p8, %p2578_p3 }
 0x34d   : > { %2024 = dma.done.wait (!%p1813_p10), %s1421_s5, 16  }
 0x34e   : > { %2026 = vsyncadd (!%p1813_p10), %s1421_s5, 4294967280  ;;  %s19_s22 = sadd.s32 1, %s2069_s22   ;;  %s2579_s7 = sld [smem:[#allocation9_spill]] }
 0x34f   : > { %p16_p11 = scmp.ge.s32.totalorder %s19_s22, 6   ;;  %s2580_s11 = sld [smem:[#allocation10_spill]] }
 0x350   : > { %s2581_s12 = smov %s2033_s13  ;;  %s2582_s13 = smov %s2037_s14 }
 0x351   : > { %s2583_s14 = smov %s2187_s8  ;;  %s2584_s15 = smov %s2045_s16 }
 0x352   : > { %s2585_s16 = smov %s2049_s17  ;;  %s2586_s17 = smov %s2190_s9 }
 0x353   : > { %s2587_s18 = smov %s2061_s20  ;;  %s2588_s19 = smov %s2065_s21 }
 0x354   : > { %s2589_s20 = smov %s2579_s7  ;;  %18 = sbr.rel (!%p16_p11) target bundleno = 9 (0x9), region = 89 }
 0x355   : > { %s2590_s21 = smov %s2580_s11 }
 0x35b   :  { %1425 = vsyncpa [#allocation4], 1 }
 0x35c   :  { %1427 = vsyncpa [#allocation4 + $0x1], 1 }
 0x35d   :  { %1428 = vsyncpa [#allocation5], 1 }
 0x35e   :  { %1430 = vsyncpa [#allocation5 + $0x1], 1 }

</bundles_post_ra>
